<compile_context>
chip_gen: v7x
topology: tpu7x:2x2x1
jax: 0.10.0
libtpu: 0.0.40
codegen_flags: <defaults>
</compile_context>

<pallas_src>
import jax
import jax.numpy as jnp
from jax.experimental import pallas as pl
from jax.experimental.pallas import tpu as pltpu

EMBEDDING_SIZE = 64
HIDDEN_SIZE = 4 * EMBEDDING_SIZE   # 256
DEFAULT_TILE_M = 8192              # ~2 MiB x-tile; amortizes grid-step overhead
_SPLIT_THRESHOLD = 1024            # split single-tile M into 2 tiles above this
_VMEM_LIMIT_BYTES = 32 * 1024 * 1024


def _ffn_kernel(x_ref, w1_ref, b1_ref, w2_ref, b2_ref, o_ref):
    # x_ref : (TILE_M, D) f32   w1_ref: (D, H) compute_dtype   b1_ref: (1, H) f32
    # w2_ref: (H, D) compute   b2_ref: (1, D) f32              o_ref : (TILE_M, D)
    x = x_ref[...].astype(w1_ref.dtype)          # in-kernel f32 -> bf16 cast (VPU, hidden under DMA)
    # linear1 + ReLU  (MXU matmul, f32 accumulation)
    h = jnp.dot(x, w1_ref[...], preferred_element_type=jnp.float32)
    h = jnp.maximum(h + b1_ref[...], 0.0)
    # linear2 + ReLU
    y = jnp.dot(h.astype(w2_ref.dtype), w2_ref[...],
                preferred_element_type=jnp.float32)
    y = jnp.maximum(y + b2_ref[...], 0.0)
    o_ref[...] = y.astype(o_ref.dtype)


def _round_up(n, k):
    return pl.cdiv(n, k) * k


def feed_forward(x, w1, b1, w2, b2, *,
                 tile_m=DEFAULT_TILE_M,
                 compute_dtype=jnp.bfloat16,
                 out_dtype=None):
    """x: (..., D) float32. Returns same shape as x, dtype out_dtype (default x.dtype)."""
    orig_shape = x.shape
    d = orig_shape[-1]
    assert d == EMBEDDING_SIZE
    out_dtype = x.dtype if out_dtype is None else out_dtype

    x2d = x.reshape(-1, d)                        # (M, D) — glue reshape in JAX
    m = x2d.shape[0]

    # Tile-size policy (no padding copies of x anywhere):
    #   * m <= tile_m, small   -> single full-extent block (block dim == array dim).
    #   * m <= tile_m, large   -> split into >=2 tiles so v7x megacore has work
    #                             on both TensorCores (tail block masked by Pallas).
    #   * m  > tile_m          -> fixed tile_m (multiple of 8); tail block masked.
    tile_m = max(8, _round_up(int(tile_m), 8))
    if m <= tile_m:
        if m >= _SPLIT_THRESHOLD:
            tm = _round_up(pl.cdiv(m, 2), 8)
        else:
            tm = m
    else:
        tm = tile_m
    num_tiles = pl.cdiv(m, tm)

    # Weights pre-cast (tiny, one-off); biases stay f32 for the f32 accumulators.
    w1c = w1.astype(compute_dtype)
    w2c = w2.astype(compute_dtype)
    b1f = b1.reshape(1, HIDDEN_SIZE).astype(jnp.float32)
    b2f = b2.reshape(1, EMBEDDING_SIZE).astype(jnp.float32)

    out = pl.pallas_call(
        _ffn_kernel,
        out_shape=jax.ShapeDtypeStruct((m, d), out_dtype),
        grid_spec=pltpu.PrefetchScalarGridSpec(
            num_scalar_prefetch=0,
            grid=(num_tiles,),
            in_specs=[
                pl.BlockSpec((tm, d), lambda i: (i, 0)),              # x tile (f32, cast in-kernel)
                pl.BlockSpec((d, HIDDEN_SIZE), lambda i: (0, 0)),     # W1 (VMEM-resident)
                pl.BlockSpec((1, HIDDEN_SIZE), lambda i: (0, 0)),     # b1 (resident)
                pl.BlockSpec((HIDDEN_SIZE, d), lambda i: (0, 0)),     # W2 (resident)
                pl.BlockSpec((1, d), lambda i: (0, 0)),               # b2 (resident)
            ],
            out_specs=pl.BlockSpec((tm, d), lambda i: (i, 0)),
        ),
        compiler_params=pltpu.CompilerParams(
            # M tiles independent -> shard across both TensorCores on v7x.
            dimension_semantics=("parallel",),
            # Covers tm=8192 blocks + f32/bf16 h intermediates (~28 MiB) on v5e's
            # 16 MiB default scope; within v6e 128 MiB and v7x 64 MiB physical.
            vmem_limit_bytes=_VMEM_LIMIT_BYTES),
    )(x2d, w1c, b1f, w2c, b2f)

    return out.reshape(orig_shape)


def init_params(key, dtype=jnp.float32):
    """Deterministic synthetic params matching nn.Linear init ranges.

    PyTorch stores linear1.weight as (4D, D); we keep the transposed (D, 4D)
    layout so the kernel does x @ W1 directly.
    """
    k1, k2, k3, k4 = jax.random.split(key, 4)
    bound1 = 1.0 / (EMBEDDING_SIZE ** 0.5)
    bound2 = 1.0 / (HIDDEN_SIZE ** 0.5)
    w1 = jax.random.uniform(k1, (EMBEDDING_SIZE, HIDDEN_SIZE), dtype,
                            minval=-bound1, maxval=bound1)
    b1 = jax.random.uniform(k2, (1, HIDDEN_SIZE), dtype,
                            minval=-bound1, maxval=bound1)
    w2 = jax.random.uniform(k3, (HIDDEN_SIZE, EMBEDDING_SIZE), dtype,
                            minval=-bound2, maxval=bound2)
    b2 = jax.random.uniform(k4, (1, EMBEDDING_SIZE), dtype,
                            minval=-bound2, maxval=bound2)
    return w1, b1, w2, b2


def _reference(x, w1, b1, w2, b2):
    h = jnp.maximum(x @ w1 + b1[0], 0.0)
    return jnp.maximum(h @ w2 + b2[0], 0.0)


if __name__ == "__main__":
    key = jax.random.PRNGKey(0)
    kx, kp, kr, km = jax.random.split(key, 4)

    batch, seq = 2, 8
    x = jax.random.normal(kx, (batch, seq, EMBEDDING_SIZE), jnp.float32)
    w1, b1, w2, b2 = init_params(kp)
    y_ref = _reference(x.reshape(-1, EMBEDDING_SIZE), w1, b1, w2, b2).reshape(x.shape)

    # 1) f32 compute path: exact-numerics check (single full-extent tile).
    y32 = jax.block_until_ready(
        feed_forward(x, w1, b1, w2, b2, compute_dtype=jnp.float32))
    assert y32.shape == x.shape and y32.dtype == x.dtype
    assert jnp.allclose(y32, y_ref, atol=1e-5, rtol=1e-5)

    # 2) default bf16-matmul / f32-accumulate / f32-out path: loose tolerance.
    ybf = jax.block_until_ready(feed_forward(x, w1, b1, w2, b2))
    assert ybf.shape == x.shape
    assert jnp.allclose(ybf, y_ref, atol=5e-2, rtol=5e-2)

    # 3) ragged-M case (M=21): single block with block dim == array dim, no pad copy.
    xr = jax.random.normal(kr, (3, 7, EMBEDDING_SIZE), jnp.float32)
    yr = jax.block_until_ready(feed_forward(xr, w1, b1, w2, b2))
    yr_ref = _reference(xr.reshape(-1, EMBEDDING_SIZE), w1, b1, w2, b2).reshape(xr.shape)
    assert yr.shape == xr.shape
    assert jnp.allclose(yr, yr_ref, atol=5e-2, rtol=5e-2)

    # 4) forced multi-tile path (M=24, tile_m=8 -> 3 grid steps, resident weights).
    xm = jax.random.normal(km, (3, 8, EMBEDDING_SIZE), jnp.float32)
    ym = jax.block_until_ready(feed_forward(xm, w1, b1, w2, b2, tile_m=8))
    ym_ref = _reference(xm.reshape(-1, EMBEDDING_SIZE), w1, b1, w2, b2).reshape(xm.shape)
    assert ym.shape == xm.shape
    assert jnp.allclose(ym, ym_ref, atol=5e-2, rtol=5e-2)

    # 5) bf16 writeback path (halves output HBM traffic).
    yb16 = jax.block_until_ready(
        feed_forward(x, w1, b1, w2, b2, out_dtype=jnp.bfloat16))
    assert yb16.dtype == jnp.bfloat16 and yb16.shape == x.shape
    assert jnp.allclose(yb16.astype(jnp.float32), y_ref, atol=1e-1, rtol=1e-1)

    print("KERNEL_OK")
</pallas_src>

<mosaic_0001>
module attributes {stable_mosaic.version = 11 : i64} {
  func.func @_ffn_kernel(%arg0: i32, %arg1: memref<16x64xf32, #tpu.memory_space<vmem>>, %arg2: memref<64x256xf32, #tpu.memory_space<vmem>>, %arg3: memref<1x256xf32, #tpu.memory_space<vmem>>, %arg4: memref<256x64xf32, #tpu.memory_space<vmem>>, %arg5: memref<1x64xf32, #tpu.memory_space<vmem>>, %arg6: memref<16x64xf32, #tpu.memory_space<vmem>>) attributes {dimension_semantics = [#tpu.dimension_semantics<parallel>], iteration_bounds = array<i64: 1>, scalar_prefetch = 0 : i64, scratch_operands = 0 : i64, tpu.core_type = #tpu.core_type<tc>, window_params = [{transform_indices = @transform_0, window_bounds = array<i64: 16, 64>}, {pipeline_mode = #tpu.pipeline_mode<synchronous>, transform_indices = @transform_1, window_bounds = array<i64: 64, 256>}, {pipeline_mode = #tpu.pipeline_mode<synchronous>, transform_indices = @transform_2, window_bounds = array<i64: 1, 256>}, {pipeline_mode = #tpu.pipeline_mode<synchronous>, transform_indices = @transform_3, window_bounds = array<i64: 256, 64>}, {pipeline_mode = #tpu.pipeline_mode<synchronous>, transform_indices = @transform_4, window_bounds = array<i64: 1, 64>}, {transform_indices = @transform_5, window_bounds = array<i64: 16, 64>}]} {
    %c0 = arith.constant 0 : index
    %c0_0 = arith.constant 0 : index
    %0 = vector.load %arg1[%c0, %c0_0] : memref<16x64xf32, #tpu.memory_space<vmem>>, vector<16x64xf32>
    %c0_1 = arith.constant 0 : index
    %c0_2 = arith.constant 0 : index
    %1 = vector.load %arg2[%c0_1, %c0_2] : memref<64x256xf32, #tpu.memory_space<vmem>>, vector<64x256xf32>
    %cst = arith.constant dense<0.000000e+00> : vector<16x256xf32>
    %2 = tpu.matmul %0, %1, %cst {dimension_numbers = #tpu.dot_dimension_numbers<[1], [0], [0], [1], [0, 0, 1, 1], [], []>} : vector<16x64xf32>, vector<64x256xf32>, vector<16x256xf32> -> vector<16x256xf32>
    %c0_3 = arith.constant 0 : index
    %c0_4 = arith.constant 0 : index
    %3 = vector.load %arg3[%c0_3, %c0_4] : memref<1x256xf32, #tpu.memory_space<vmem>>, vector<1x256xf32>
    %4 = vector.broadcast %3 : vector<1x256xf32> to vector<16x256xf32>
    %5 = arith.addf %2, %4 : vector<16x256xf32>
    %cst_5 = arith.constant 0.000000e+00 : f32
    %6 = vector.broadcast %cst_5 : f32 to vector<16x256xf32>
    %7 = arith.maximumf %5, %6 : vector<16x256xf32>
    %c0_6 = arith.constant 0 : index
    %c0_7 = arith.constant 0 : index
    %8 = vector.load %arg4[%c0_6, %c0_7] : memref<256x64xf32, #tpu.memory_space<vmem>>, vector<256x64xf32>
    %cst_8 = arith.constant dense<0.000000e+00> : vector<16x64xf32>
    %9 = tpu.matmul %7, %8, %cst_8 {dimension_numbers = #tpu.dot_dimension_numbers<[1], [0], [0], [1], [0, 0, 1, 1], [], []>} : vector<16x256xf32>, vector<256x64xf32>, vector<16x64xf32> -> vector<16x64xf32>
    %c0_9 = arith.constant 0 : index
    %c0_10 = arith.constant 0 : index
    %10 = vector.load %arg5[%c0_9, %c0_10] : memref<1x64xf32, #tpu.memory_space<vmem>>, vector<1x64xf32>
    %11 = vector.broadcast %10 : vector<1x64xf32> to vector<16x64xf32>
    %12 = arith.addf %9, %11 : vector<16x64xf32>
    %cst_11 = arith.constant 0.000000e+00 : f32
    %13 = vector.broadcast %cst_11 : f32 to vector<16x64xf32>
    %14 = arith.maximumf %12, %13 : vector<16x64xf32>
    %c0_12 = arith.constant 0 : index
    %c0_13 = arith.constant 0 : index
    %15 = vector.load %arg6[%c0_12, %c0_13] : memref<16x64xf32, #tpu.memory_space<vmem>>, vector<16x64xf32>
    tpu.vector_store %arg6[%c0_12, %c0_13], %14 {strides = array<i32>} : memref<16x64xf32, #tpu.memory_space<vmem>>, vector<16x64xf32>,
    return
  }
  func.func @transform_0(%arg0: i32) -> (i32, i32) {
    %c0_i32 = arith.constant 0 : i32
    %c0_i32_0 = arith.constant 0 : i32
    return %arg0, %c0_i32 : i32, i32
  }
  func.func @transform_1(%arg0: i32) -> (i32, i32) {
    %c0_i32 = arith.constant 0 : i32
    %c0_i32_0 = arith.constant 0 : i32
    %c0_i32_1 = arith.constant 0 : i32
    return %c0_i32, %c0_i32_0 : i32, i32
  }
  func.func @transform_2(%arg0: i32) -> (i32, i32) {
    %c0_i32 = arith.constant 0 : i32
    %c0_i32_0 = arith.constant 0 : i32
    %c0_i32_1 = arith.constant 0 : i32
    return %c0_i32, %c0_i32_0 : i32, i32
  }
  func.func @transform_3(%arg0: i32) -> (i32, i32) {
    %c0_i32 = arith.constant 0 : i32
    %c0_i32_0 = arith.constant 0 : i32
    %c0_i32_1 = arith.constant 0 : i32
    return %c0_i32, %c0_i32_0 : i32, i32
  }
  func.func @transform_4(%arg0: i32) -> (i32, i32) {
    %c0_i32 = arith.constant 0 : i32
    %c0_i32_0 = arith.constant 0 : i32
    %c0_i32_1 = arith.constant 0 : i32
    return %c0_i32, %c0_i32_0 : i32, i32
  }
  func.func @transform_5(%arg0: i32) -> (i32, i32) {
    %c0_i32 = arith.constant 0 : i32
    %c0_i32_0 = arith.constant 0 : i32
    return %arg0, %c0_i32 : i32, i32
  }
}

</mosaic_0001>

<bundles_post_ra>
// kernel: tpu_custom_call.1
= control target key start
LH: loop header
LB: loop body
LE: loop exit
PB: predicated region body
PF: predicated region fallthrough
CT: control target
= control target key end

     0   :  { %v390_v7 = vmov 0.0   ;;  %s598_s0 = inlined_call_operand.vmem [shape: f32[16,64], index: 0, kind: input, shape index: {}]   ;;  %s599_s1 = inlined_call_operand.vmem [shape: f32[64,256], index: 1, kind: input, shape index: {}]   ;;  %s600_s2 = inlined_call_operand.vmem [shape: f32[1,256], index: 2, kind: input, shape index: {}]   ;;  %s601_s3 = inlined_call_operand.vmem [shape: f32[256,64], index: 3, kind: input, shape index: {}]   ;;  %s602_s4 = inlined_call_operand.vmem [shape: f32[1,64], index: 4, kind: input, shape index: {}]   ;;  %s603_s5 = inlined_call_operand.hbm [shape: f32[16,64], index: 5, kind: output, shape index: {}]  }
   0x1   :  { %v24_v0 = vld [vmem:[%s599_s1 + $0x8] sm:$0xff]  ;;  %v26_v1 = vld [vmem:[%s599_s1 + $0x18] sm:$0xff]  ;;  %v23_v2 = vld [vmem:[%s599_s1] sm:$0xff]  ;;  %122 = vmatprep.mubr.f32.mxu0 %v390_v7 }
   0x2   :  { %v314_v3 = vpack.c.bf16 %v26_v1, %v24_v0  ;;  %v25_v4 = vld [vmem:[%s599_s1 + $0x10] sm:$0xff]  ;;  %v28_v5 = vld [vmem:[%s599_s1 + $0x28] sm:$0xff]  ;;  %v30_v6 = vld [vmem:[%s599_s1 + $0x38] sm:$0xff] }
   0x3   :  { %v316_v8 = vpack.c.bf16 %v25_v4, %v23_v2  ;;  %v318_v9 = vpack.c.bf16 %v30_v6, %v28_v5  ;;  %v27_v10 = vld [vmem:[%s599_s1 + $0x20] sm:$0xff]  ;;  %v29_v11 = vld [vmem:[%s599_s1 + $0x30] sm:$0xff]  ;;  %v32_v12 = vld [vmem:[%s599_s1 + $0x48] sm:$0xff] }
   0x4   :  { %315 = vmatprep.subr.bf16.mxu0 %v314_v3  ;;  %v34_v13 = vld [vmem:[%s599_s1 + $0x58] sm:$0xff]  ;;  %v320_v14 = vpack.c.bf16 %v29_v11, %v27_v10  ;;  %v31_v15 = vld [vmem:[%s599_s1 + $0x40] sm:$0xff]  ;;  %v33_v17 = vld [vmem:[%s599_s1 + $0x50] sm:$0xff] }
   0x5   :  { %317 = vmatpush1.bf16.msra.mxu0 %v316_v8  ;;  %v322_v16 = vpack.c.bf16 %v34_v13, %v32_v12  ;;  %v36_v18 = vld [vmem:[%s599_s1 + $0x68] sm:$0xff]  ;;  %v38_v19 = vld [vmem:[%s599_s1 + $0x78] sm:$0xff]  ;;  %v155_v20 = vld [vmem:[%s601_s3 + $0x80] sm:$0xff]  ;;  %v324_v27 = vpack.c.bf16 %v33_v17, %v31_v15 }
   0x6   :  { %319 = vmatprep.subr.bf16.mxu0 %v318_v9  ;;  %v156_v21 = vld [vmem:[%s601_s3 + $0x88] sm:$0xff]  ;;  %v139_v22 = vld [vmem:[%s601_s3] sm:$0xff]  ;;  %v157_v25 = vld [vmem:[%s601_s3 + $0x90] sm:$0xff]  ;;  %v326_v33 = vpack.c.bf16 %v38_v19, %v36_v18 }
   0x7   :  { %v330_v23 = vpack.c.bf16 %v156_v21, %v155_v20  ;;  %v140_v24 = vld [vmem:[%s601_s3 + $0x8] sm:$0xff]  ;;  %v158_v26 = vld [vmem:[%s601_s3 + $0x98] sm:$0xff]  ;;  %v141_v30 = vld [vmem:[%s601_s3 + $0x10] sm:$0xff] }
   0x8   :  { %v332_v28 = vpack.c.bf16 %v140_v24, %v139_v22  ;;  %v334_v29 = vpack.c.bf16 %v158_v26, %v157_v25  ;;  %v142_v31 = vld [vmem:[%s601_s3 + $0x18] sm:$0xff]  ;;  %v159_v32 = vld [vmem:[%s601_s3 + $0xa0] sm:$0xff]  ;;  %v37_v35 = vld [vmem:[%s599_s1 + $0x70] sm:$0xff] }
   0x9   :  { %321 = vmatpush1.bf16.msra.mxu0 %v320_v14  ;;  %v35_v34 = vld [vmem:[%s599_s1 + $0x60] sm:$0xff]  ;;  %331 = vmatprep.subr.bf16.mxu1 %v330_v23  ;;  %v160_v36 = vld [vmem:[%s601_s3 + $0xa8] sm:$0xff]  ;;  %v336_v37 = vpack.c.bf16 %v142_v31, %v141_v30  ;;  %v161_v42 = vld [vmem:[%s601_s3 + $0xb0] sm:$0xff] }
   0xa   :  { %323 = vmatprep.subr.bf16.mxu0 %v322_v16  ;;  %333 = vmatpush3.bf16.msra.mxu1 %v332_v28  ;;  %v338_v38 = vpack.c.bf16 %v160_v36, %v159_v32  ;;  %v143_v39 = vld [vmem:[%s601_s3 + $0x20] sm:$0xff]  ;;  %v144_v40 = vld [vmem:[%s601_s3 + $0x28] sm:$0xff]  ;;  %v328_v41 = vpack.c.bf16 %v37_v35, %v35_v34  ;;  %v162_v43 = vld [vmem:[%s601_s3 + $0xb8] sm:$0xff] }
   0xb   :  { %335 = vmatprep.subr.bf16.mxu1 %v334_v29  ;;  %v340_v44 = vpack.c.bf16 %v144_v40, %v143_v39  ;;  %v342_v45 = vpack.c.bf16 %v162_v43, %v161_v42  ;;  %v145_v46 = vld [vmem:[%s601_s3 + $0x30] sm:$0xff]  ;;  %v146_v47 = vld [vmem:[%s601_s3 + $0x38] sm:$0xff] }
   0xd   :  { %325 = vmatpush1.bf16.msra.mxu0 %v324_v27 }
   0xe   :  { %327 = vmatprep.subr.bf16.mxu0 %v326_v33  ;;  %337 = vmatpush3.bf16.msra.mxu1 %v336_v37 }
   0xf   :  { %339 = vmatprep.subr.bf16.mxu1 %v338_v38 }
  0x10   :  { %10 = vsyncpa [#allocation3], 0  ;;  %v21_v48 = vld [vmem:[%s598_s0] sm:$0xff]  ;;  %vm51_vm0 = vcmask 523264   ;;  %v164_v50 = vld [vmem:[%s601_s3 + $0xc8] sm:$0xff]  ;;  %v344_v51 = vpack.c.bf16 %v146_v47, %v145_v46  ;;  %v41_v11 = vlaneseq  ;;  %s391_s17 = smov [#allocation2]  }
  0x11   :  { %329 = vmatpush1.bf16.msra.mxu0 %v328_v41  ;;  %v163_v49 = vld [vmem:[%s601_s3 + $0xc0] sm:$0xff]  ;;  %v148_v54 = vld [vmem:[%s601_s3 + $0x48] sm:$0xff]  ;;  %v165_v56 = vld [vmem:[%s601_s3 + $0xd0] sm:$0xff]  ;;  %s262_s18 = sshll.u32 %s391_s17, 4  ;;  %s263_s18 = int_to_ptr.vmem [resolvable:$true] %s262_s18 }
  0x12   :  { %341 = vmatpush3.bf16.msra.mxu1 %v340_v44  ;;  %v346_v52 = vpack.c.bf16 %v164_v50, %v163_v49  ;;  %v147_v53 = vld [vmem:[%s601_s3 + $0x40] sm:$0xff]  ;;  %v22_v55 = vld [vmem:[%s598_s0 + $0x8] sm:$0xff]  ;;  %v166_v57 = vld [vmem:[%s601_s3 + $0xd8] sm:$0xff]  ;;  %v42_v12 = vshrl.u32 %v41_v11, 7  ;;  %s366_s19 = scalar_lea.vmem %s263_s18, 256  ;;  %p371_p1 = scmp.lt.s32.totalorder %s263_s18, %s263_s18 }
  0x13   :  { %343 = vmatprep.subr.bf16.mxu1 %v342_v45  ;;  %v348_v58 = vpack.c.bf16 %v148_v54, %v147_v53  ;;  %v350_v59 = vpack.c.bf16 %v166_v57, %v165_v56  ;;  %v149_v60 = vld [vmem:[%s601_s3 + $0x50] sm:$0xff]  ;;  %v150_v61 = vld [vmem:[%s601_s3 + $0x58] sm:$0xff]  ;;  %v167_v62 = vld [vmem:[%s601_s3 + $0xe0] sm:$0xff]  ;;  %p367_p0 = scmp.ne.s32.totalorder %s263_s18, %s366_s19  ;;  %p372_p2 = scmp.lt.s32.totalorder %s366_s19, %s366_s19 }
  0x14   :  { %273 = vmatmul.mubr.msk.f32.vlgmr.msra.gmra.mrb[0].mxu0 %vm51_vm0, %v21_v48  ;;  %v168_v63 = vld [vmem:[%s601_s3 + $0xe8] sm:$0xff]  ;;  %v352_v0 = vpack.c.bf16 %v150_v61, %v149_v60  ;;  %v151_v2 = vld [vmem:[%s601_s3 + $0x60] sm:$0xff]  ;;  %v169_v5 = vld [vmem:[%s601_s3 + $0xf0] sm:$0xff]  ;;  %v43_v13 = vsub.s32 0, %v42_v12  ;;  %v47_v15 = vsub.s32 1, %v42_v12 }
  0x15   :  { %128 = vmatprep.mubr.f32.mxu0 %v390_v7  ;;  %v354_v1 = vpack.c.bf16 %v168_v63, %v167_v62  ;;  %v152_v3 = vld [vmem:[%s601_s3 + $0x68] sm:$0xff]  ;;  %v170_v6 = vld [vmem:[%s601_s3 + $0xf8] sm:$0xff]  ;;  %v153_v8 = vld [vmem:[%s601_s3 + $0x70] sm:$0xff]  ;;  %p373_p3 = por %p372_p2, %p371_p1 }
  0x16   :  { %345 = vmatpush3.bf16.msra.mxu1 %v344_v51  ;;  %v356_v4 = vpack.c.bf16 %v152_v3, %v151_v2  ;;  %v358_v7 = vpack.c.bf16 %v170_v6, %v169_v5  ;;  %v154_v9 = vld [vmem:[%s601_s3 + $0x78] sm:$0xff]  ;;  %v39_v14 = vld [vmem:[%s600_s2] sm:$0x3] }
  0x17   :  { %347 = vmatprep.subr.bf16.mxu1 %v346_v52  ;;  %v360_v10 = vpack.c.bf16 %v154_v9, %v153_v8  ;;  %v44_v16 = vrot.slane %v39_v14, %v43_v13  ;;  %v48_v17 = vrot.slane %v39_v14, %v47_v15  ;;  %v275_v31 = vld [vmem:[%s602_s4] ss:$0 sm:$0xff]  ;;  %p374_p4 = pnand %p373_p3, %p367_p0 }
  0x18   :  { %274 = vmatmul.mubr.msk.f32.gmra.mrb[2].mxu0 %vm51_vm0, %v22_v55 }
  0x1a   :  { %349 = vmatpush3.bf16.msra.mxu1 %v348_v58 }
  0x1b   :  { %351 = vmatprep.subr.bf16.mxu1 %v350_v59 }
  0x1e   :  { %353 = vmatpush3.bf16.msra.mxu1 %v352_v0 }
  0x1f   :  { %355 = vmatprep.subr.bf16.mxu1 %v354_v1 }
  0x22   :  { %357 = vmatpush3.bf16.msra.mxu1 %v356_v4 }
  0x23   :  { %359 = vmatprep.subr.bf16.mxu1 %v358_v7 }
  0x26   :  { %361 = vmatpush3.bf16.msra.mxu1 %v360_v10 }
  0xe7   :  { %v124_v18 = vpop.f32.mrb[0].mxu0 }
  0xe8   :  { %v125_v19 = vadd.f32 %v124_v18, %v44_v16  ;;  %v126_v20 = vpop.f32.mrb[1].mxu0 }
  0xe9   :  { %v127_v21 = vadd.f32 %v126_v20, %v48_v17 }
  0xea   :  { %v135_v24 = vmax.f32 %v125_v19, 0.0 }
  0xeb   :  { %v130_v22 = vpop.f32.mrb[2].mxu0  ;;  %v136_v23 = vmax.f32 %v127_v21, 0.0 }
  0xec   :  { %v131_v25 = vadd.f32 %v130_v22, %v44_v16  ;;  %v132_v26 = vpop.f32.mrb[3].mxu0 }
  0xed   :  { %v133_v27 = vadd.f32 %v132_v26, %v48_v17  ;;  %242 = vmatprep.mubr.f32.mxu1 %v136_v23 }
  0xee   :  { %243 = vmatmul.mubr.f32.vlgmr.msra.gmra.mrb[0].mxu1 %v135_v24  ;;  %v137_v29 = vmax.f32 %v131_v25, 0.0 }
  0xef   :  { %v138_v28 = vmax.f32 %v133_v27, 0.0 }
  0xf1   :  { %247 = vmatprep.mubr.f32.mxu1 %v138_v28 }
  0xf2   :  { %248 = vmatmul.mubr.f32.gmra.mrb[2].mxu1 %v137_v29 }
 0x1c1   :  { %v308_v30 = vpop.f32.mrb[0].mxu1 }
 0x1c2   :  { %v309_v32 = vpop.f32.mrb[1].mxu1 }
 0x1c3   :  { %v310_v33 = vadd.f32 %v309_v32, %v308_v30 }
 0x1c5   :  { %v245_v34 = vadd.f32 %v310_v33, %v275_v31  ;;  %v311_v35 = vpop.f32.mrb[2].mxu1 }
 0x1c6   :  { %v312_v36 = vpop.f32.mrb[3].mxu1 }
 0x1c7   :  { %v253_v37 = vmax.f32 %v245_v34, 0.0  ;;  %v313_v38 = vadd.f32 %v312_v36, %v311_v35 }
 0x1c9   :  { %255 = vst.msk [vmem:[#allocation2] sm:$0xff] %vm51_vm0, %v253_v37  ;;  %v250_v39 = vadd.f32 %v313_v38, %v275_v31 }
 0x1cb   :  { %v254_v40 = vmax.f32 %v250_v39, 0.0 }
 0x1cd   :  { %256 = vst.msk [vmem:[#allocation2 + $0x8] sm:$0xff] %vm51_vm0, %v254_v40 }
 0x1ce   :  { %377 = shalt.err (!%p374_p4)
}
 0x1cf   :  { %s378_s21 = scalar_lea.hbm %s603_s5, 256 }
 0x1d0   :  { %p379_p5 = scmp.ne.s32.totalorder %s603_s5, %s378_s21  ;;  %p382_p6 = scmp.lt.u32.totalorder %s378_s21, %s603_s5 }
 0x1d2   :  { %p384_p7 = pnand %p382_p6, %p379_p5 }
 0x1d4   :  { %387 = shalt.err (!%p384_p7)
}
 0x1d5   :  { %s392_s24 = smov 128   ;;  %s393_s25 = smov 8  }
 0x1d6   :  { %268 = dma.vmem_to_hbm [thread:$0]  %s263_s18, 256, %s603_s5, [#allocation3], %s392_s24, %s392_s24, %s393_s25  }
 0x1d7   :  { %388 = dma.done.wait [#allocation3], 256  }
 0x1d8   :  { %389 = vsyncadd [#allocation3], 4294967040 }
 0x1d9   :  { %272 = vsyncpa [#allocation3], 1 }

</bundles_post_ra>
